<compile_context>
chip_gen: v6e
topology: v6e:2x2x1
jax: 0.10.0
libtpu: 0.0.40
codegen_flags: <defaults>
</compile_context>

<pallas_src>
import jax
import jax.numpy as jnp
from jax.experimental import pallas as pl
from jax.experimental.pallas import tpu as pltpu


def _twinq_kernel(xT_ref, w1T_ref, b1_ref, w2T_ref, b2_ref, w3T_ref, b3_ref,
                  out_ref):
    """Fused twin-Q MLP for one batch tile, batch-in-lanes. All in VMEM."""
    # Layer 1: (2H, D_in) @ (D_in, tm) -> (2H, tm).  Streamed LHS is the tiny
    # fused weight, so this is ~2H/8 MXU pushes per 256-lane N-tile.
    h = jnp.dot(w1T_ref[...], xT_ref[...],
                preferred_element_type=jnp.float32) + b1_ref[...]
    h = jnp.maximum(h, 0.0)                                          # (2H, tm)
    # Layer 2: block-diagonal (2H, 2H) keeps the two heads independent.
    h = jnp.dot(w2T_ref[...], h,
                preferred_element_type=jnp.float32) + b2_ref[...]
    h = jnp.maximum(h, 0.0)                                          # (2H, tm)
    # Layer 3: (2, 2H) @ (2H, tm) -> (2, tm); sublane 0 is q1, sublane 1 is q2.
    q = jnp.dot(w3T_ref[...], h,
                preferred_element_type=jnp.float32) + b3_ref[...]
    # min(q1, q2): 2-sublane reduce -> lane-dense (1, tm) output block.
    out_ref[...] = jnp.min(q, axis=0, keepdims=True).astype(out_ref.dtype)


def fuse_twinq_params(params):
    """One-time packing of the 12 per-head arrays into 6 fused, transposed
    arrays for the batch-in-lanes kernel."""
    H = params["w1a"].shape[1]
    f32 = jnp.float32
    # Layer 1: W1^T = [w1a | w1b]^T : (2H, D_in);   b1 : (2H, 1)
    w1T = jnp.concatenate([params["w1a"], params["w1b"]], axis=1).T
    b1 = jnp.concatenate([params["b1a"], params["b1b"]], axis=1).T
    # Layer 2: block-diag(w2a, w2b)^T = block-diag(w2a^T, w2b^T) : (2H, 2H)
    zhh = jnp.zeros((H, H), f32)
    w2T = jnp.concatenate(
        [jnp.concatenate([params["w2a"].T, zhh], axis=1),
         jnp.concatenate([zhh, params["w2b"].T], axis=1)], axis=0)
    b2 = jnp.concatenate([params["b2a"], params["b2b"]], axis=1).T     # (2H, 1)
    # Layer 3: [[w3a^T, 0], [0, w3b^T]] : (2, 2H);   b3 : (2, 1)
    zh = jnp.zeros((1, H), f32)
    w3T = jnp.concatenate(
        [jnp.concatenate([params["w3a"].T, zh], axis=1),
         jnp.concatenate([zh, params["w3b"].T], axis=1)], axis=0)
    b3 = jnp.concatenate([params["b3a"], params["b3b"]], axis=1).T     # (2, 1)
    return (w1T, b1, w2T, b2, w3T, b3)


def twinq_forward(action, condition, fused, *, tm=1024, min_grid=2):
    """min(q1(x), q2(x)) for x = concat([action, condition], -1). Returns (B, 1)."""
    w1T, b1, w2T, b2, w3T, b3 = fused
    B, d_act = action.shape
    Bc, d_cond = condition.shape
    assert B == Bc, "action/condition batch mismatch"
    d_in = d_act + d_cond
    assert w1T.shape[1] == d_in, "fused weights do not match input dims"
    two_h = w2T.shape[0]

    # Batch lives in the lane dimension: tile must be a multiple of 128 lanes.
    tm = max(128, (int(tm) // 128) * 128)
    # Cap the tile so grid_m >= min_grid when the batch allows it: keeps both
    # TensorCores busy on v7x; single-TC chips only pay ~0.35 us of extra
    # per-step overhead.
    tm_cap = pl.cdiv(pl.cdiv(B, min_grid), 128) * 128
    tm = max(128, min(tm, tm_cap))
    grid_m = pl.cdiv(B, tm)
    b_pad = grid_m * tm

    # torch.cat + transpose-to-batch-in-lanes is a tiny XLA op vs. the MXU
    # work; doing it here keeps layer 1 as one dense merged matmul.
    xT = jnp.concatenate([action, condition], axis=-1).T               # (d_in, B)
    if b_pad != B:
        xT = jnp.pad(xT, ((0, 0), (0, b_pad - B)))

    def const_spec(arr):   # grid-invariant block: fetched once, never re-DMA'd
        return pl.BlockSpec(arr.shape, lambda i: (0, 0))

    weights = (w1T, b1, w2T, b2, w3T, b3)
    flops = 2 * b_pad * (d_in * two_h + two_h * two_h + two_h * 2)
    bytes_accessed = 4 * (b_pad * (d_in + 1) + sum(int(w.size) for w in weights))

    out = pl.pallas_call(
        _twinq_kernel,
        out_shape=jax.ShapeDtypeStruct((1, b_pad), jnp.float32),
        grid_spec=pltpu.PrefetchScalarGridSpec(
            num_scalar_prefetch=0,
            grid=(grid_m,),
            in_specs=[pl.BlockSpec((d_in, tm), lambda i: (0, i))]
                     + [const_spec(w) for w in weights],
            out_specs=pl.BlockSpec((1, tm), lambda i: (0, i)),
        ),
        compiler_params=pltpu.CompilerParams(
            dimension_semantics=("parallel",)),
        cost_estimate=pl.CostEstimate(
            flops=flops, transcendentals=0, bytes_accessed=bytes_accessed),
    )(xT, *weights)
    return out[0, :B].reshape(B, 1)


def init_twinq_params(key, input_dim, hidden_dim):
    """PyTorch-Linear-style init (uniform +-1/sqrt(fan_in)).

    Weights stored transposed: (in, out). Biases: (1, out)."""
    dims = [input_dim, hidden_dim, hidden_dim, 1]
    params = {}
    for head in ("a", "b"):
        for layer in range(3):
            fan_in, fan_out = dims[layer], dims[layer + 1]
            key, kw, kb = jax.random.split(key, 3)
            bound = 1.0 / jnp.sqrt(fan_in)
            params[f"w{layer + 1}{head}"] = jax.random.uniform(
                kw, (fan_in, fan_out), jnp.float32, -bound, bound)
            params[f"b{layer + 1}{head}"] = jax.random.uniform(
                kb, (1, fan_out), jnp.float32, -bound, bound)
    return params


def twinq_reference(x, params):
    """Plain-JAX reference (un-fused weights) for correctness checking."""
    def q_head(h, w1, b1, w2, b2, w3, b3):
        h = jnp.maximum(h @ w1 + b1, 0.0)
        h = jnp.maximum(h @ w2 + b2, 0.0)
        return h @ w3 + b3
    q1 = q_head(x, params["w1a"], params["b1a"], params["w2a"], params["b2a"],
                params["w3a"], params["b3a"])
    q2 = q_head(x, params["w1b"], params["b1b"], params["w2b"], params["b2b"],
                params["w3b"], params["b3b"])
    return jnp.minimum(q1, q2)


if __name__ == "__main__":
    # Small, module-consistent shapes.  batch=200 is NOT a multiple of the
    # 128-lane tile (exercises the pad/slice path) and yields grid_m=2 so the
    # "parallel" grid axis can shard across both TensorCores on v7x.
    state_dim, action_dim = 12, 4             # input_dim = 16 after concat
    hidden_dim = 32
    batch = 200

    key = jax.random.PRNGKey(0)
    k_act, k_cond, k_params = jax.random.split(key, 3)

    action = jax.random.normal(k_act, (batch, action_dim), jnp.float32)
    condition = jax.random.normal(k_cond, (batch, state_dim), jnp.float32)
    params = init_twinq_params(k_params, action_dim + state_dim, hidden_dim)

    # One-time weight fusion (kept out of the per-call path per review);
    # the jit closure lets XLA treat the fused weights as constants.
    fused = fuse_twinq_params(params)
    fwd = jax.jit(lambda a, c: twinq_forward(a, c, fused))

    out = jax.block_until_ready(fwd(action, condition))

    x = jnp.concatenate([action, condition], axis=-1)       # reference only
    ref = twinq_reference(x, params)

    assert out.shape == (batch, 1)
    assert jnp.allclose(out, ref, atol=1e-3, rtol=1e-3), "mismatch vs reference"

    print("KERNEL_OK")
</pallas_src>

<mosaic_0001>
module attributes {stable_mosaic.version = 11 : i64} {
  func.func @_twinq_kernel(%arg0: i32, %arg1: memref<16x128xf32, #tpu.memory_space<vmem>>, %arg2: memref<64x16xf32, #tpu.memory_space<vmem>>, %arg3: memref<64x1xf32, #tpu.memory_space<vmem>>, %arg4: memref<64x64xf32, #tpu.memory_space<vmem>>, %arg5: memref<64x1xf32, #tpu.memory_space<vmem>>, %arg6: memref<2x64xf32, #tpu.memory_space<vmem>>, %arg7: memref<2x1xf32, #tpu.memory_space<vmem>>, %arg8: memref<1x128xf32, #tpu.memory_space<vmem>>) attributes {dimension_semantics = [#tpu.dimension_semantics<parallel>], iteration_bounds = array<i64: 2>, scalar_prefetch = 0 : i64, scratch_operands = 0 : i64, tpu.core_type = #tpu.core_type<tc>, window_params = [{transform_indices = @transform_0, window_bounds = array<i64: 16, 128>}, {pipeline_mode = #tpu.pipeline_mode<synchronous>, transform_indices = @transform_1, window_bounds = array<i64: 64, 16>}, {pipeline_mode = #tpu.pipeline_mode<synchronous>, transform_indices = @transform_2, window_bounds = array<i64: 64, 1>}, {pipeline_mode = #tpu.pipeline_mode<synchronous>, transform_indices = @transform_3, window_bounds = array<i64: 64, 64>}, {pipeline_mode = #tpu.pipeline_mode<synchronous>, transform_indices = @transform_4, window_bounds = array<i64: 64, 1>}, {pipeline_mode = #tpu.pipeline_mode<synchronous>, transform_indices = @transform_5, window_bounds = array<i64: 2, 64>}, {pipeline_mode = #tpu.pipeline_mode<synchronous>, transform_indices = @transform_6, window_bounds = array<i64: 2, 1>}, {transform_indices = @transform_7, window_bounds = array<i64: 1, 128>}]} {
    %c0 = arith.constant 0 : index
    %c0_0 = arith.constant 0 : index
    %0 = vector.load %arg2[%c0, %c0_0] : memref<64x16xf32, #tpu.memory_space<vmem>>, vector<64x16xf32>
    %c0_1 = arith.constant 0 : index
    %c0_2 = arith.constant 0 : index
    %1 = vector.load %arg1[%c0_1, %c0_2] : memref<16x128xf32, #tpu.memory_space<vmem>>, vector<16x128xf32>
    %cst = arith.constant dense<0.000000e+00> : vector<64x128xf32>
    %2 = tpu.matmul %0, %1, %cst {dimension_numbers = #tpu.dot_dimension_numbers<[1], [0], [0], [1], [0, 0, 1, 1], [], []>} : vector<64x16xf32>, vector<16x128xf32>, vector<64x128xf32> -> vector<64x128xf32>
    %c0_3 = arith.constant 0 : index
    %c0_4 = arith.constant 0 : index
    %3 = vector.load %arg3[%c0_3, %c0_4] : memref<64x1xf32, #tpu.memory_space<vmem>>, vector<64x1xf32>
    %4 = vector.broadcast %3 : vector<64x1xf32> to vector<64x128xf32>
    %5 = arith.addf %2, %4 : vector<64x128xf32>
    %cst_5 = arith.constant 0.000000e+00 : f32
    %6 = vector.broadcast %cst_5 : f32 to vector<64x128xf32>
    %7 = arith.maximumf %5, %6 : vector<64x128xf32>
    %c0_6 = arith.constant 0 : index
    %c0_7 = arith.constant 0 : index
    %8 = vector.load %arg4[%c0_6, %c0_7] : memref<64x64xf32, #tpu.memory_space<vmem>>, vector<64x64xf32>
    %cst_8 = arith.constant dense<0.000000e+00> : vector<64x128xf32>
    %9 = tpu.matmul %8, %7, %cst_8 {dimension_numbers = #tpu.dot_dimension_numbers<[1], [0], [0], [1], [0, 0, 1, 1], [], []>} : vector<64x64xf32>, vector<64x128xf32>, vector<64x128xf32> -> vector<64x128xf32>
    %c0_9 = arith.constant 0 : index
    %c0_10 = arith.constant 0 : index
    %10 = vector.load %arg5[%c0_9, %c0_10] : memref<64x1xf32, #tpu.memory_space<vmem>>, vector<64x1xf32>
    %11 = vector.broadcast %10 : vector<64x1xf32> to vector<64x128xf32>
    %12 = arith.addf %9, %11 : vector<64x128xf32>
    %cst_11 = arith.constant 0.000000e+00 : f32
    %13 = vector.broadcast %cst_11 : f32 to vector<64x128xf32>
    %14 = arith.maximumf %12, %13 : vector<64x128xf32>
    %c0_12 = arith.constant 0 : index
    %c0_13 = arith.constant 0 : index
    %15 = vector.load %arg6[%c0_12, %c0_13] : memref<2x64xf32, #tpu.memory_space<vmem>>, vector<2x64xf32>
    %cst_14 = arith.constant dense<0.000000e+00> : vector<2x128xf32>
    %16 = tpu.matmul %15, %14, %cst_14 {dimension_numbers = #tpu.dot_dimension_numbers<[1], [0], [0], [1], [0, 0, 1, 1], [], []>} : vector<2x64xf32>, vector<64x128xf32>, vector<2x128xf32> -> vector<2x128xf32>
    %c0_15 = arith.constant 0 : index
    %c0_16 = arith.constant 0 : index
    %17 = vector.load %arg7[%c0_15, %c0_16] : memref<2x1xf32, #tpu.memory_space<vmem>>, vector<2x1xf32>
    %18 = vector.broadcast %17 : vector<2x1xf32> to vector<2x128xf32>
    %19 = arith.addf %16, %18 : vector<2x128xf32>
    %cst_17 = arith.constant dense<0x7F800000> : vector<128xf32>
    %20 = vector.multi_reduction <minimumf>, %19, %cst_17 [0] : vector<2x128xf32> to vector<128xf32>
    %21 = vector.shape_cast %20 : vector<128xf32> to vector<1x128xf32>
    %c0_18 = arith.constant 0 : index
    %c0_19 = arith.constant 0 : index
    %22 = vector.load %arg8[%c0_18, %c0_19] : memref<1x128xf32, #tpu.memory_space<vmem>>, vector<1x128xf32>
    tpu.vector_store %arg8[%c0_18, %c0_19], %21 {strides = array<i32>} : memref<1x128xf32, #tpu.memory_space<vmem>>, vector<1x128xf32>,
    return
  }
  func.func @transform_0(%arg0: i32) -> (i32, i32) {
    %c0_i32 = arith.constant 0 : i32
    %c0_i32_0 = arith.constant 0 : i32
    return %c0_i32, %arg0 : i32, i32
  }
  func.func @transform_1(%arg0: i32) -> (i32, i32) {
    %c0_i32 = arith.constant 0 : i32
    %c0_i32_0 = arith.constant 0 : i32
    %c0_i32_1 = arith.constant 0 : i32
    return %c0_i32, %c0_i32_0 : i32, i32
  }
  func.func @transform_2(%arg0: i32) -> (i32, i32) {
    %c0_i32 = arith.constant 0 : i32
    %c0_i32_0 = arith.constant 0 : i32
    %c0_i32_1 = arith.constant 0 : i32
    return %c0_i32, %c0_i32_0 : i32, i32
  }
  func.func @transform_3(%arg0: i32) -> (i32, i32) {
    %c0_i32 = arith.constant 0 : i32
    %c0_i32_0 = arith.constant 0 : i32
    %c0_i32_1 = arith.constant 0 : i32
    return %c0_i32, %c0_i32_0 : i32, i32
  }
  func.func @transform_4(%arg0: i32) -> (i32, i32) {
    %c0_i32 = arith.constant 0 : i32
    %c0_i32_0 = arith.constant 0 : i32
    %c0_i32_1 = arith.constant 0 : i32
    return %c0_i32, %c0_i32_0 : i32, i32
  }
  func.func @transform_5(%arg0: i32) -> (i32, i32) {
    %c0_i32 = arith.constant 0 : i32
    %c0_i32_0 = arith.constant 0 : i32
    %c0_i32_1 = arith.constant 0 : i32
    return %c0_i32, %c0_i32_0 : i32, i32
  }
  func.func @transform_6(%arg0: i32) -> (i32, i32) {
    %c0_i32 = arith.constant 0 : i32
    %c0_i32_0 = arith.constant 0 : i32
    %c0_i32_1 = arith.constant 0 : i32
    return %c0_i32, %c0_i32_0 : i32, i32
  }
  func.func @transform_7(%arg0: i32) -> (i32, i32) {
    %c0_i32 = arith.constant 0 : i32
    %c0_i32_0 = arith.constant 0 : i32
    return %c0_i32, %arg0 : i32, i32
  }
}

</mosaic_0001>

<bundles_post_ra>
// kernel: _lambda_.1
= control target key start
LH: loop header
LB: loop body
LE: loop exit
PB: predicated region body
PF: predicated region fallthrough
CT: control target
= control target key end

     0   :  { %12 = vsyncpa [#allocation4], 0  ;;  %s1382_s0 = inlined_call_operand.vmem [shape: f32[16,256], index: 0, kind: input, shape index: {}]   ;;  %s1383_s1 = inlined_call_operand.hbm [shape: f32[64,16], index: 1, kind: input, shape index: {}]   ;;  %s1384_s2 = inlined_call_operand.hbm [shape: f32[64,1], index: 2, kind: input, shape index: {}]   ;;  %s1385_s3 = inlined_call_operand.vmem [shape: f32[64,64], index: 3, kind: input, shape index: {}]   ;;  %s1386_s4 = inlined_call_operand.vmem [shape: f32[64,1], index: 4, kind: input, shape index: {}]   ;;  %s1387_s5 = inlined_call_operand.vmem [shape: f32[2,64], index: 5, kind: input, shape index: {}]   ;;  %s1388_s6 = inlined_call_operand.vmem [shape: f32[2,1], index: 6, kind: input, shape index: {}]   ;;  %s1389_s7 = inlined_call_operand.vmem [shape: f32[1,256], index: 7, kind: output, shape index: {}]  }
   0x1   :  { %13 = vsyncpa [#allocation6], 0  ;;  %s1210_s24 = smov 0   ;;  %s1212_s25 = smov 0  }
   0x2   :  { %s1214_s26 = smov 0  }
   0x3 LB: > { %s1226_s27 = sadd.s32 4294967295, %s1161_s26   ;;  %s1229_s28 = sadd.s32 1, %s1161_s26   ;;  %s1161_s26 = sphi %s1214_s26, %s1400_s26   ;;  %s1157_s25 = sphi %s1212_s25, %s1399_s25   ;;  %s1153_s24 = sphi %s1210_s24, %s1398_s24  }
   0x4   : > { %s23_s29 = ssub.s32 %s1161_s26, %s1229_s28  ;;  %s26_s30 = sadd.s32 1, %s1157_s25 }
   0x5   : > { %p24_p0 = scmp.eq.s32.totalorder %s23_s29, 0  ;;  %p33_p1 = scmp.ne.s32.totalorder %s1157_s25, %s1153_s24 }
   0x6   : > { %p34_p2 = scmp.eq.s32.totalorder %s1161_s26, 0  ;;  %p900_p3 = scmp.ge.s32.totalorder %s1161_s26, 1 }
   0x7   : > { %s1239_s8 = scalar_select %p24_p0, %s1157_s25, %s26_s30  }
   0x8   : > { %p1241_p4 = por %p34_p2, %p33_p1  ;;  %p202_p5 = scmp.lt.s32.totalorder %s1161_s26, 3 }
   0x9   : > { %p1390_p6 = scmp.eq.s32.totalorder %s1226_s27, 0  ;;  %s1163_s11 = smov [#allocation3]  }
   0xa   : > { %p1247_p7 = pnand %p900_p3, %p202_p5  ;;  %s214_s12 = sshll.u32 %s1163_s11, 4  ;;  %s215_s12 = int_to_ptr.vmem [resolvable:$true] %s214_s12 }
   0xb   : > { %s1164_s14 = smov [#allocation5]   ;;  %s1090_s16 = scalar_lea.vmem %s215_s12, 1024 }
   0xc   : > { %p1035_p8 = pneg %p1247_p7  ;;  %s227_s15 = sshll.u32 %s1164_s14, 4  ;;  %s228_s15 = int_to_ptr.vmem [resolvable:$true] %s227_s15 }
   0xd   : > { %p1091_p11 = scmp.ne.s32.totalorder %s215_s12, %s1090_s16  ;;  %p1098_p0 = scmp.lt.s32.totalorder %s215_s12, %s215_s12 }
   0xe   : > { %p1255_p9 = pnand %p1390_p6, %p1035_p8  ;;  %p1099_p1 = scmp.lt.s32.totalorder %s1090_s16, %s1090_s16 }
  0x10   : > { %p1081_p10 = pneg %p1255_p9  ;;  %p1100_p2 = por %p1099_p1, %p1098_p0 }
  0x12   : > { %p1093_p12 = pnand %p1091_p11, %p1081_p10 }
  0x14   : > { %p1094_p13 = pneg %p1093_p12 }
  0x16   : > { %p1101_p3 = pnand %p1100_p2, %p1094_p13 }
  0x18   : > { %1104 = shalt.err (!%p1101_p3)
}
  0x19   : > { %s1165_s17 = smov 128   ;;  %s1166_s18 = smov 8  }
  0x1a   : > { %1038 = dma.hbm_to_vmem [thread:$0]  (!%p1255_p9), %s1383_s1, 1024, %s215_s12, [#allocation4], %s1165_s17, %s1165_s17, %s1166_s18  }
  0x1b   : > { %s1116_s21 = scalar_lea.vmem %s228_s15, 1024  ;;  %p1124_p12 = scmp.lt.s32.totalorder %s228_s15, %s228_s15 }
  0x1c   : > { %p1117_p5 = scmp.ne.s32.totalorder %s228_s15, %s1116_s21  ;;  %p1125_p6 = scmp.lt.s32.totalorder %s1116_s21, %s1116_s21 }
  0x1e   : > { %p1119_p8 = pnand %p1117_p5, %p1081_p10  ;;  %p1126_p0 = por %p1125_p6, %p1124_p12 }
  0x20   : > { %p1120_p11 = pneg %p1119_p8 }
  0x22   : > { %p1127_p13 = pnand %p1126_p0, %p1120_p11 }
  0x24   : > { %1130 = shalt.err (!%p1127_p13)
}
  0x25   : > { %1041 = dma.hbm_to_vmem [thread:$0]  (!%p1255_p9), %s1384_s2, 1024, %s228_s15, [#allocation6], %s1165_s17, %s1165_s17, %s1166_s18  }
  0x26   : > { %p903_p1 = scmp.ge.s32.totalorder %s1161_s26, 2 }
  0x28   : > { %249 = sbr.rel (%p903_p1) target bundleno = 50 (0x32), region = 40 }
  0x2d   : > { %252 = sbr.rel (!%p1241_p4) target bundleno = 50 (0x32), region = 44  ;;  %s254_s29 = sand.u32 (%p1241_p4), 1, %s1157_s25  }
  0x2e   : > { %s905_s30 = sshll.u32 (%p1241_p4), %s1161_s26, 3  ;;  %s904_s11 = sshll.u32 (%p1241_p4), %s254_s29, 4 }
  0x2f   : > { %s258_s16 = scalar_lea.vmem (%p1241_p4), %s1382_s0, %s905_s30  ;;  %s256_s13 = scalar_lea.vmem (%p1241_p4), [#allocation2], %s904_s11 }
  0x30   : > { %v289_v0 = vld [vmem:[%s258_s16] sm:$0xff] (%p1241_p4)  ;;  %v291_v1 = vld [vmem:[%s258_s16 + $0x10] sm:$0xff] (%p1241_p4) }
  0x31   : > { %290 = vst [vmem:[%s256_s13] sm:$0xff] (%p1241_p4), %v289_v0  ;;  %292 = vst [vmem:[%s256_s13 + $0x8] sm:$0xff] (%p1241_p4), %v291_v1 }
  0x32 PF: > { %301 = sbr.rel (%p1247_p7) target bundleno = 723 (0x2d3), region = 82  ;;  %s304_s9 = sand.u32 (!%p1247_p7), 1, %s1153_s24  }
  0x33   : > { %s907_s15 = sshll.u32 (!%p1247_p7), %s304_s9, 4  ;;  %p1394_p4 = scmp.eq.s32.totalorder (!%p1247_p7), %s1226_s27, 0 }
  0x34   : > { %s306_s26 = scalar_lea.vmem (!%p1247_p7), [#allocation2], %s907_s15 }
  0x37   : > { %1144 = dma.done.wait (%p1394_p4), [#allocation4], 1024   ;;  %p1395_p6 = pmov %p1394_p4 }
  0x38   : > { %p1396_p9 = pmov %p1394_p4 }
  0x39   : > { %1146 = vsyncadd (%p1395_p6), [#allocation4], 4294966272 }
  0x3a   : > { %1148 = dma.done.wait (%p1396_p9), [#allocation6], 1024   ;;  %p1397_p10 = pmov %p1394_p4 }
  0x3b   : > { %v1167_v2 = vmov 0   ;;  %vm402_vm0 = vcmask 130048   ;;  %v353_v3 = vld [vmem:[%s306_s26 + $0x8] sm:$0xff]  ;;  %v352_v4 = vld [vmem:[%s306_s26] sm:$0xff]  ;;  %vm596_vm1 = vcmask 523264   ;;  %vm1169_vm2 = vmmov 0  }
  0x3c   : > { %1150 = vsyncadd (%p1397_p10), [#allocation6], 4294966272  ;;  %1077 = vset.pattern.permute.xlu0 %v1167_v2  ;;  %1078 = vset.pattern.permute.xlu1 %v1167_v2  ;;  %v344_v5 = vld [vmem:[#allocation3] sm:$0xff]  ;;  %v345_v6 = vld [vmem:[#allocation3 + $0x8] sm:$0xff]  ;;  %vm814_vm3 = vcmask 1041408   ;;  %p341_p7 = scmp.lt.s32.totalorder %s1226_s27, 1 }
  0x3d   : > { %964 = vmatprep.subr.mxu0 %v353_v3  ;;  %968 = vmatprep.mubr.msk.f32.mxu0 %vm402_vm0, %v344_v5  ;;  %v346_v7 = vld [vmem:[#allocation3 + $0x10] sm:$0xff]  ;;  %v361_v8 = vld [vmem:[#allocation5 + $0x38] sm:$0xff]  ;;  %v359_v9 = vld [vmem:[#allocation5 + $0x28] sm:$0xff] }
  0x3e   : > { %965 = vmatpush3.msra.mxu0 %v353_v3  ;;  %399 = vperm.xlu0 %1077, %v361_v8   ;;  %v360_v10 = vld [vmem:[#allocation5 + $0x30] sm:$0xff]  ;;  %v347_v11 = vld [vmem:[#allocation3 + $0x18] sm:$0xff]  ;;  %v358_v12 = vld [vmem:[#allocation5 + $0x20] sm:$0xff]  ;;  %s1402_s27 = smov (!%p341_p7, %s1226_s27), 1 }
  0x3f   : > { %966 = vmatprep.subr.mxu0 %v352_v4  ;;  %389 = vperm.xlu1 %1078, %v359_v9   ;;  %v348_v13 = vld [vmem:[#allocation3 + $0x20] sm:$0xff]  ;;  %v357_v14 = vld [vmem:[#allocation5 + $0x18] sm:$0xff]  ;;  %v349_v15 = vld [vmem:[#allocation3 + $0x28] sm:$0xff]  ;;  %s343_s24 = scalar_lea.vmem %s1389_s7, %s1402_s27 }
  0x40   : > { %967 = vmatpush3.msra.mxu0 %v352_v4  ;;  %v356_v16 = vld [vmem:[#allocation5 + $0x10] sm:$0xff]  ;;  %v355_v18 = vld [vmem:[#allocation5 + $0x8] sm:$0xff]  ;;  %v351_v19 = vld [vmem:[#allocation3 + $0x38] sm:$0xff] }
  0x41   : > { %969 = vmatmul.mubr.msk.f32.vlgmr.msra.gmra.mxu0 %vm402_vm0, %v345_v6  ;;  %v350_v17 = vld [vmem:[#allocation3 + $0x30] sm:$0xff]  ;;  %v354_v20 = vld [vmem:[#allocation5] sm:$0xff]  ;;  %v555_v21 = vld [vmem:[%s1386_s4 + $0x38] sm:$0xff]  ;;  %v1168_v6 = vmov 0.0  }
  0x42   : > { %971 = vmatprep.mubr.msk.f32.mxu0 %vm402_vm0, %v346_v7  ;;  %394 = vperm.xlu0 %1077, %v360_v10   ;;  %v554_v22 = vld [vmem:[%s1386_s4 + $0x30] sm:$0xff]  ;;  %v553_v23 = vld [vmem:[%s1386_s4 + $0x28] sm:$0xff]  ;;  %v552_v24 = vld [vmem:[%s1386_s4 + $0x20] sm:$0xff] }
  0x43   : > { %384 = vperm.xlu1 %1078, %v358_v12   ;;  %v551_v25 = vld [vmem:[%s1386_s4 + $0x18] sm:$0xff]  ;;  %v550_v26 = vld [vmem:[%s1386_s4 + $0x10] sm:$0xff]  ;;  %v549_v27 = vld [vmem:[%s1386_s4 + $0x8] sm:$0xff]  ;;  %1008 = vmatprep.subr.mxu0 %v1168_v6 }
  0x44   : > { %v548_v28 = vld [vmem:[%s1386_s4] sm:$0xff]  ;;  %v541_v63 = vld [vmem:[%s1385_s3 + $0x8] sm:$0xff]  ;;  %v542_v0 = vld [vmem:[%s1385_s3 + $0x10] sm:$0xff] }
  0x45   : > { %972 = vmatmul.mubr.msk.f32.gmra.mxu0 %vm402_vm0, %v347_v11  ;;  %v735_v29 = vld [vmem:[%s1388_s6] sm:$0x3]  ;;  %v543_v1 = vld [vmem:[%s1385_s3 + $0x18] sm:$0xff]  ;;  %v545_v3 = vld [vmem:[%s1385_s3 + $0x28] sm:$0xff] }
  0x46   : > { %974 = vmatprep.mubr.msk.f32.mxu0 %vm402_vm0, %v348_v13  ;;  %379 = vperm.xlu0 %1077, %v357_v14   ;;  %v540_v30 = vld [vmem:[%s1385_s3] sm:$0xff]  ;;  %v546_v4 = vld [vmem:[%s1385_s3 + $0x30] sm:$0xff]  ;;  %v547_v5 = vld [vmem:[%s1385_s3 + $0x38] sm:$0xff] }
  0x47   : > { %374 = vperm.xlu1 %1078, %v356_v16   ;;  %996 = vmatprep.mubr.msk.f32.mxu1 %vm596_vm1, %v540_v30  ;;  %v544_v2 = vld [vmem:[%s1385_s3 + $0x20] sm:$0xff] }
  0x49   : > { %975 = vmatmul.mubr.msk.f32.gmra.mxu0 %vm402_vm0, %v349_v15 }
  0x4a   : > { %977 = vmatprep.mubr.msk.f32.mxu0 %vm402_vm0, %v350_v17  ;;  %369 = vperm.xlu0 %1077, %v355_v18  }
  0x4b   : > { %364 = vperm.xlu1 %1078, %v354_v20  }
  0x4d   : > { %978 = vmatmul.mubr.msk.f32.gmra.mxu0 %vm402_vm0, %v351_v19 }
  0x4e   : > { %593 = vperm.xlu0 %1077, %v555_v21   ;;  %1024 = vmatprep.mubr.msk.f32.mxu0 %vm1169_vm2, %v1168_v6 }
  0x4f   : > { %588 = vperm.xlu1 %1078, %v554_v22  }
  0x52   : > { %583 = vperm.xlu0 %1077, %v553_v23  }
  0x53   : > { %578 = vperm.xlu1 %1078, %v552_v24  }
  0x56   : > { %573 = vperm.xlu0 %1077, %v551_v25  }
  0x57   : > { %568 = vperm.xlu1 %1078, %v550_v26  }
  0x5a   : > { %563 = vperm.xlu0 %1077, %v549_v27  }
  0x5b   : > { %558 = vperm.xlu1 %1078, %v548_v28  }
  0x5e   : > { %738 = vperm.xlu0 %1077, %v735_v29  }
  0xb9   : > { %v400_v33 = vpop.permute.xlu0 %399 }
  0xba   : > { %v390_v35 = vpop.permute.xlu1 %389 }
  0xbd   : > { %v395_v38 = vpop.permute.xlu0 %394 }
  0xbe   : > { %v385_v40 = vpop.permute.xlu1 %384 }
  0xc1   : > { %v380_v47 = vpop.permute.xlu0 %379 }
  0xc2   : > { %v375_v50 = vpop.permute.xlu1 %374 }
  0xc5   : > { %v370_v55 = vpop.permute.xlu0 %369 }
  0xc6   : > { %v365_v58 = vpop.permute.xlu1 %364 }
  0xc9   : > { %v594_v9 = vpop.permute.xlu0 %593 }
  0xca   : > { %v589_v11 = vpop.permute.xlu1 %588 }
  0xcd   : > { %v584_v14 = vpop.permute.xlu0 %583 }
  0xce   : > { %v579_v16 = vpop.permute.xlu1 %578 }
  0xd1   : > { %v574_v23 = vpop.permute.xlu0 %573 }
  0xd2   : > { %v569_v26 = vpop.permute.xlu1 %568 }
 0x101   : > { %v970_v31 = vpop.f32.mrf.mxu0 }
 0x102   : > { %v499_v56 = vadd.f32 %v970_v31, %v370_v55  ;;  %v564_v31 = vpop.permute.xlu0 %563 }
 0x103   : > { %v493_v32 = vpop.f32.mrf.mxu0 }
 0x104   : > { %v494_v59 = vadd.f32 %v493_v32, %v365_v58  ;;  %v533_v61 = vmax.f32 %v499_v56, 0.0 }
 0x105   : > { %v973_v34 = vpop.f32.mrf.mxu0 }
 0x106   : > { %v509_v51 = vadd.f32 %v973_v34, %v380_v47  ;;  %v532_v62 = vmax.f32 %v494_v59, 0.0  ;;  %v559_v34 = vpop.permute.xlu1 %558 }
 0x107   : > { %v503_v36 = vpop.f32.mrf.mxu0 }
 0x108   : > { %v504_v53 = vadd.f32 %v503_v36, %v375_v50  ;;  %v535_v57 = vmax.f32 %v509_v51, 0.0 }
 0x109   : > { %v976_v37 = vpop.f32.mrf.mxu0 }
 0x10a   : > { %v519_v44 = vadd.f32 %v976_v37, %v390_v35  ;;  %v534_v60 = vmax.f32 %v504_v53, 0.0 }
 0x10b   : > { %v513_v39 = vpop.f32.mrf.mxu0 }
 0x10c   : > { %v514_v48 = vadd.f32 %v513_v39, %v385_v40  ;;  %v537_v52 = vmax.f32 %v519_v44, 0.0  ;;  %v734_v39 = vld [vmem:[%s1387_s5] sm:$0x3]  ;;  %v739_v40 = vpop.permute.xlu0 %738 }
 0x10d   : > { %v979_v41 = vpop.f32.mrf.mxu0 }
 0x10e   : > { %v529_v42 = vadd.f32 %v979_v41, %v400_v33  ;;  %v536_v54 = vmax.f32 %v514_v48, 0.0 }
 0x10f   : > { %v523_v43 = vpop.f32.mrf.mxu0 }
 0x110   : > { %v539_v45 = vmax.f32 %v529_v42, 0.0  ;;  %v524_v46 = vadd.f32 %v523_v43, %v395_v38 }
 0x112   : > { %v538_v49 = vmax.f32 %v524_v46, 0.0  ;;  %980 = vmatprep.subr.mxu1 %v539_v45 }
 0x113   : > { %981 = vmatpush3.msra.mxu1 %v539_v45 }
 0x114   : > { %982 = vmatprep.subr.mxu1 %v538_v49 }
 0x115   : > { %983 = vmatpush3.msra.mxu1 %v538_v49 }
 0x116   : > { %984 = vmatprep.subr.mxu1 %v537_v52 }
 0x117   : > { %985 = vmatpush3.msra.mxu1 %v537_v52 }
 0x118   : > { %986 = vmatprep.subr.mxu1 %v536_v54 }
 0x119   : > { %987 = vmatpush3.msra.mxu1 %v536_v54 }
 0x11a   : > { %988 = vmatprep.subr.mxu1 %v535_v57 }
 0x11b   : > { %989 = vmatpush3.msra.mxu1 %v535_v57 }
 0x11c   : > { %990 = vmatprep.subr.mxu1 %v534_v60 }
 0x11d   : > { %991 = vmatpush3.msra.mxu1 %v534_v60 }
 0x11e   : > { %992 = vmatprep.subr.mxu1 %v533_v61 }
 0x11f   : > { %993 = vmatpush3.msra.mxu1 %v533_v61 }
 0x120   : > { %994 = vmatprep.subr.mxu1 %v532_v62 }
 0x121   : > { %995 = vmatpush3.msra.mxu1 %v532_v62 }
 0x122   : > { %997 = vmatmul.mubr.msk.f32.vlgmr.msra.gmra.mxu1 %vm596_vm1, %v541_v63 }
 0x123   : > { %999 = vmatprep.mubr.msk.f32.mxu1 %vm596_vm1, %v542_v0 }
 0x126   : > { %1000 = vmatmul.mubr.msk.f32.gmra.mxu1 %vm596_vm1, %v543_v1 }
 0x127   : > { %1002 = vmatprep.mubr.msk.f32.mxu1 %vm596_vm1, %v544_v2 }
 0x12a   : > { %1003 = vmatmul.mubr.msk.f32.gmra.mxu1 %vm596_vm1, %v545_v3 }
 0x12b   : > { %1005 = vmatprep.mubr.msk.f32.mxu1 %vm596_vm1, %v546_v4 }
 0x12e   : > { %1006 = vmatmul.mubr.msk.f32.gmra.mxu1 %vm596_vm1, %v547_v5 }
 0x1e2   : > { %v998_v7 = vpop.f32.mrf.mxu1 }
 0x1e3   : > { %v693_v32 = vadd.f32 %v998_v7, %v564_v31 }
 0x1e4   : > { %v687_v8 = vpop.f32.mrf.mxu1 }
 0x1e5   : > { %v688_v35 = vadd.f32 %v687_v8, %v559_v34  ;;  %v727_v37 = vmax.f32 %v693_v32, 0.0 }
 0x1e6   : > { %v1001_v10 = vpop.f32.mrf.mxu1 }
 0x1e7   : > { %v703_v27 = vadd.f32 %v1001_v10, %v574_v23  ;;  %v726_v38 = vmax.f32 %v688_v35, 0.0 }
 0x1e8   : > { %v697_v12 = vpop.f32.mrf.mxu1 }
 0x1e9   : > { %v698_v29 = vadd.f32 %v697_v12, %v569_v26  ;;  %v729_v33 = vmax.f32 %v703_v27, 0.0 }
 0x1ea   : > { %v1004_v13 = vpop.f32.mrf.mxu1 }
 0x1eb   : > { %v713_v20 = vadd.f32 %v1004_v13, %v584_v14  ;;  %v728_v36 = vmax.f32 %v698_v29, 0.0 }
 0x1ec   : > { %v707_v15 = vpop.f32.mrf.mxu1 }
 0x1ed   : > { %v708_v24 = vadd.f32 %v707_v15, %v579_v16  ;;  %v731_v28 = vmax.f32 %v713_v20, 0.0 }
 0x1ee   : > { %v1007_v17 = vpop.f32.mrf.mxu1 }
 0x1ef   : > { %v723_v18 = vadd.f32 %v1007_v17, %v594_v9  ;;  %v730_v30 = vmax.f32 %v708_v24, 0.0 }
 0x1f0   : > { %v717_v19 = vpop.f32.mrf.mxu1 }
 0x1f1   : > { %v733_v21 = vmax.f32 %v723_v18, 0.0  ;;  %v718_v22 = vadd.f32 %v717_v19, %v589_v11 }
 0x1f3   : > { %v732_v25 = vmax.f32 %v718_v22, 0.0  ;;  %1009 = vmatpush3.msra.mxu0 %v733_v21 }
 0x1f4   : > { %1010 = vmatprep.subr.mxu0 %v1168_v6 }
 0x1f5   : > { %1011 = vmatpush3.msra.mxu0 %v732_v25 }
 0x1f6   : > { %1012 = vmatprep.subr.mxu0 %v1168_v6 }
 0x1f7   : > { %1013 = vmatpush3.msra.mxu0 %v731_v28 }
 0x1f8   : > { %1014 = vmatprep.subr.mxu0 %v1168_v6 }
 0x1f9   : > { %1015 = vmatpush3.msra.mxu0 %v730_v30 }
 0x1fa   : > { %1016 = vmatprep.subr.mxu0 %v1168_v6 }
 0x1fb   : > { %1017 = vmatpush3.msra.mxu0 %v729_v33 }
 0x1fc   : > { %1018 = vmatprep.subr.mxu0 %v1168_v6 }
 0x1fd   : > { %1019 = vmatpush3.msra.mxu0 %v728_v36 }
 0x1fe   : > { %1020 = vmatprep.subr.mxu0 %v1168_v6 }
 0x1ff   : > { %1021 = vmatpush3.msra.mxu0 %v727_v37 }
 0x200   : > { %1022 = vmatprep.subr.mxu0 %v1168_v6 }
 0x201   : > { %1023 = vmatpush3.msra.mxu0 %v726_v38 }
 0x202   : > { %1025 = vmatmul.mubr.msk.f32.vlgmr.msra.gmra.mxu0 %vm596_vm1, %v734_v39 }
 0x2c2   : > { %v810_v41 = vpop.f32.mrf.mxu0 }
 0x2c3   : > { %v811_v42 = vadd.f32 %v810_v41, %v739_v40 }
 0x2c4   : > { %v1026_v43 = vpop.f32.mrf.mxu0 }
 0x2c5   : > { %v815_v44 = vsel %vm814_vm3, %v811_v42, inf }
 0x2c6   : > { %v816_v45 = vrot.slane %v815_v44, 4 }
 0x2c8   : > { %v817_v46 = vmin.f32 %v815_v44, %v816_v45 }
 0x2ca   : > { %v818_v47 = vrot.slane %v817_v46, 2 }
 0x2cc   : > { %v819_v48 = vmin.f32 %v817_v46, %v818_v47 }
 0x2ce   : > { %v820_v49 = vrot.slane %v819_v48, 1 }
 0x2d0   : > { %v821_v50 = vmin.f32 %v819_v48, %v820_v49 }
 0x2d2   : > { %822 = vst [vmem:[%s343_s24] sm:$0x1] %v821_v50 }
 0x2d3 PF: > { %p16_p2 = scmp.ge.s32.totalorder %s1229_s28, 4   ;;  %s1398_s24 = smov %s1157_s25 }
 0x2d4   : > { %s1399_s25 = smov %s1239_s8  ;;  %s1400_s26 = smov %s1229_s28 }
 0x2d5   :  { %18 = sbr.rel (!%p16_p2) target bundleno = 3 (0x3), region = 130 }
 0x2da   :  { %840 = vsyncpa [#allocation4], 1 }
 0x2db   :  { %842 = vsyncpa [#allocation4 + $0x1], 1 }
 0x2dc   :  { %843 = vsyncpa [#allocation6], 1 }

</bundles_post_ra>
